<compile_context>
chip_gen: v5e
topology: v5e:2x2
jax: 0.10.0
libtpu: 0.0.40
codegen_flags: <defaults>
</compile_context>

<pallas_src>
import jax
import jax.numpy as jnp
import numpy as np
from jax.experimental import pallas as pl
from jax.experimental.pallas import tpu as pltpu

# ---- small synthetic config (consistent with the module's forward) -------------------
D_MODEL = 32                     # BartConfig.d_model
NUM_BARTS = 2                    # len(self.barts)
SPLIT_LEN = D_MODEL              # torch.split(input_ids, d_model, dim=1) chunk length
SEQ_LEN = NUM_BARTS * SPLIT_LEN
BATCH = 2                        # NOTE: use a multiple of 8 in production (sublanes)
NUM_LABELS = 1                   # project_config.num_of_labels (regression)
VOCAB = 97
EOS_TOKEN_ID = 2
ND = D_MODEL * NUM_BARTS         # regression head input_dim == inner_dim (= 64)
P = 128                          # lane-dense padded width for the head

# Head-parameter slab layout (rows x 128 lanes, all offsets multiples of 8 or 1-row):
ROW_DW = 0                       # dense_w      rows [0, ND)
ROW_DB = ND                      # dense_b      row  ND        (8 rows reserved)
ROW_OW = ND + 8                  # out_proj_w   rows [ND+8, ND+8+P)
ROW_OB = ND + 8 + P              # out_proj_b   row  ND+8+P    (8 rows reserved)
SLAB_ROWS = ND + 8 + P + 8       # = 208 (multiple of 8)


# ---------------------------------------------------------------------------------------
# Fused kernel: per-bart eos-row gather (manual DMA) -> dense (+b) -> tanh -> out (+b)
# ---------------------------------------------------------------------------------------
def _fused_forward_kernel(rows_ref,                 # SMEM (NB*B,) int32: b*S + sel
                          hid0_ref, hid1_ref,       # ANY  (B*S, D) f32 per bart
                          slab_ref,                 # VMEM (SLAB_ROWS, P) f32
                          out_ref,                  # VMEM (B, P) f32
                          sent_buf,                 # VMEM scratch (NB*B, D) f32
                          sem):                     # DMA sems (NB*B,)
    hid_refs = (hid0_ref, hid1_ref)

    # Gather only the NB*B selected sentence rows. Start every DMA, then wait for all,
    # so the tiny copies overlap each other (and the slab's pipelined DMA).
    copies = []
    for i in range(NUM_BARTS):                       # statically unrolled (NB = 2)
        for b in range(BATCH):
            k = i * BATCH + b
            cp = pltpu.make_async_copy(
                hid_refs[i].at[pl.ds(rows_ref[k], 1), :],   # (1, D) dynamic row
                sent_buf.at[pl.ds(k, 1), :],
                sem.at[k],
            )
            cp.start()
            copies.append(cp)
    for cp in copies:
        cp.wait()

    # acc accumulates x @ dense_w + dense_b without materializing the concatenated
    # (B, ND) feature row:  x @ W == sum_i sentence_i @ W[i*D:(i+1)*D, :]
    dense_b = slab_ref[pl.ds(ROW_DB, 1), :]                           # (1, P)
    acc = jnp.broadcast_to(dense_b, (BATCH, P))                       # (B, P)
    for i in range(NUM_BARTS):
        sent_i = sent_buf[pl.ds(i * BATCH, BATCH), :]                 # (B, D)
        w_i = slab_ref[pl.ds(ROW_DW + i * D_MODEL, D_MODEL), :]       # (D, P)
        acc = acc + jnp.dot(sent_i, w_i, preferred_element_type=jnp.float32)

    h = jnp.tanh(acc)                                                 # (B, P); pad lanes 0
    out_w = slab_ref[pl.ds(ROW_OW, P), :]                             # (P, P)
    out_b = slab_ref[pl.ds(ROW_OB, 1), :]                             # (1, P)
    out_ref[...] = jnp.dot(h, out_w, preferred_element_type=jnp.float32) + out_b


def fused_forward(eos_rows, hiddens, head_slab):
    """eos_rows (NB*B,) int32; hiddens: NB arrays (B*S, D) f32; head_slab (208, 128)."""
    out_padded = pl.pallas_call(
        _fused_forward_kernel,
        out_shape=jax.ShapeDtypeStruct((BATCH, P), jnp.float32),
        grid_spec=pltpu.PrefetchScalarGridSpec(
            num_scalar_prefetch=1,
            grid=(1,),
            in_specs=[
                pl.BlockSpec(memory_space=pl.ANY),                     # hidden bart 0
                pl.BlockSpec(memory_space=pl.ANY),                     # hidden bart 1
                pl.BlockSpec((SLAB_ROWS, P), lambda i, rows: (0, 0)),  # head slab
            ],
            out_specs=pl.BlockSpec((BATCH, P), lambda i, rows: (0, 0)),
            scratch_shapes=[
                pltpu.VMEM((NUM_BARTS * BATCH, D_MODEL), jnp.float32),
                pltpu.SemaphoreType.DMA((NUM_BARTS * BATCH,)),
            ],
        ),
        compiler_params=pltpu.CompilerParams(dimension_semantics=("arbitrary",)),
    )(eos_rows, *hiddens, head_slab)
    return out_padded[:, :NUM_LABELS]                # slice the real logits column(s)


# ---------------------------------------------------------------------------------------
# Wrapper-side <eos> bookkeeping (one vectorized pass over all barts)
# ---------------------------------------------------------------------------------------
def compute_eos_rows(input_ids):
    """Flat row index (b*S + sel) of the selected sentence row, per bart per example.

    Matches the torch try/except: if the <eos> counts differ across examples (or are
    zero) for a bart, fall back to the last row (S-1) for every example of that bart.
    """
    ids = input_ids.reshape(BATCH, NUM_BARTS, SPLIT_LEN).transpose(1, 0, 2)  # (NB,B,S)
    mask = ids == EOS_TOKEN_ID
    counts = jnp.sum(mask, axis=2)                                           # (NB, B)
    ok = jnp.logical_and(jnp.max(counts, axis=1) == jnp.min(counts, axis=1),
                         jnp.min(counts, axis=1) > 0)                        # (NB,)
    iota = jnp.arange(SPLIT_LEN, dtype=jnp.int32)[None, None, :]
    last_eos = jnp.max(jnp.where(mask, iota, -1), axis=2)                    # (NB, B)
    sel = jnp.where(ok[:, None], last_eos, SPLIT_LEN - 1)                    # (NB, B)
    rows = jnp.arange(BATCH, dtype=jnp.int32)[None, :] * SPLIT_LEN + sel     # (NB, B)
    return rows.reshape(-1).astype(jnp.int32)                                # (NB*B,)


# ---------------------------------------------------------------------------------------
# Parameters (deterministic, synthetic) and forward glue
# ---------------------------------------------------------------------------------------
def init_params(key):
    keys = jax.random.split(key, NUM_BARTS + 4)
    # Bart stubs: one embedding table per bart.
    embeds = [0.02 * jax.random.normal(keys[i], (VOCAB, D_MODEL), jnp.float32)
              for i in range(NUM_BARTS)]
    # LinearHead weights stored pre-transposed as (in, out) so the kernel does x @ W.
    dense_w = jax.random.normal(keys[NUM_BARTS], (ND, ND), jnp.float32) / np.sqrt(ND)
    dense_b = 0.01 * jax.random.normal(keys[NUM_BARTS + 1], (1, ND), jnp.float32)
    out_w = jax.random.normal(keys[NUM_BARTS + 2], (ND, NUM_LABELS), jnp.float32) / np.sqrt(ND)
    out_b = 0.01 * jax.random.normal(keys[NUM_BARTS + 3], (1, NUM_LABELS), jnp.float32)
    return embeds, (dense_w, dense_b, out_w, out_b)


def pack_head_params(head_params):
    """Zero-pad and pack the whole head into one lane-dense (208, 128) f32 slab.

    Padding is zeros everywhere, so padded lanes stay tanh(0)=0 and zero-weighted:
    the real logits are bit-identical to the unpadded computation.
    """
    dense_w, dense_b, out_w, out_b = head_params
    slab = jnp.zeros((SLAB_ROWS, P), jnp.float32)
    slab = slab.at[ROW_DW:ROW_DW + ND, :ND].set(dense_w)
    slab = slab.at[ROW_DB, :ND].set(dense_b[0])
    slab = slab.at[ROW_OW:ROW_OW + ND, :NUM_LABELS].set(out_w)
    slab = slab.at[ROW_OB, :NUM_LABELS].set(out_b[0])
    return slab


def forward(input_ids, embeds, head_slab):
    # Stubbed bart forward per split (see TODO above). Each bart's hidden states are
    # flattened to (B*S, D) host-side (pure layout reshape) and passed as raw refs;
    # only the selected eos rows are DMA'd inside the kernel.
    hiddens = [
        jnp.take(embeds[i], input_ids[:, i * SPLIT_LEN:(i + 1) * SPLIT_LEN], axis=0)
           .reshape(BATCH * SPLIT_LEN, D_MODEL)
        for i in range(NUM_BARTS)
    ]
    eos_rows = compute_eos_rows(input_ids)
    return fused_forward(eos_rows, hiddens, head_slab)            # (B, num_labels)


def reference_forward(input_ids, embeds, head_params):
    """Pure-JAX reference mirroring the PyTorch semantics (correctness check only).

    NOTE: uses Python bool()/int() on traced values, so it only works eagerly — do not
    wrap in jax.jit or copy into production paths.
    """
    sents = []
    for i in range(NUM_BARTS):
        sp = input_ids[:, i * SPLIT_LEN:(i + 1) * SPLIT_LEN]
        hid = jnp.take(embeds[i], sp, axis=0)
        mask = sp == EOS_TOKEN_ID
        counts = mask.sum(axis=1)
        if bool(jnp.all(counts == counts[0])) and int(counts[0]) > 0:
            idx = jnp.max(jnp.where(mask, jnp.arange(SPLIT_LEN)[None, :], -1), axis=1)
        else:
            idx = jnp.full((BATCH,), SPLIT_LEN - 1, jnp.int32)
        sents.append(hid[jnp.arange(BATCH), idx, :])
    x = jnp.concatenate(sents, axis=1)
    dw, db, ow, ob = head_params
    return jnp.tanh(x @ dw + db) @ ow + ob


if __name__ == "__main__":
    key = jax.random.PRNGKey(0)
    k_param, k_ids = jax.random.split(key)
    embeds, head_params = init_params(k_param)
    head_slab = pack_head_params(head_params)

    # Case 1: one <eos> per example per split (happy path).
    input_ids = jax.random.randint(k_ids, (BATCH, SEQ_LEN), 3, VOCAB, dtype=jnp.int32)
    for i in range(NUM_BARTS):
        input_ids = input_ids.at[:, i * SPLIT_LEN + (SPLIT_LEN - 2)].set(EOS_TOKEN_ID)

    logits = jax.block_until_ready(forward(input_ids, embeds, head_slab))
    ref = reference_forward(input_ids, embeds, head_params)
    np.testing.assert_allclose(np.asarray(logits), np.asarray(ref), rtol=1e-5, atol=1e-5)
    assert logits.shape == (BATCH, NUM_LABELS)

    # Case 2: mismatched <eos> counts in bart 0 -> last-row fallback path.
    input_ids2 = input_ids.at[0, 3].set(EOS_TOKEN_ID)
    logits2 = jax.block_until_ready(forward(input_ids2, embeds, head_slab))
    ref2 = reference_forward(input_ids2, embeds, head_params)
    np.testing.assert_allclose(np.asarray(logits2), np.asarray(ref2), rtol=1e-5, atol=1e-5)

    print("KERNEL_OK")
</pallas_src>

<mosaic_0001>
module attributes {stable_mosaic.version = 11 : i64} {
  func.func @_fused_forward_kernel(%arg0: i32, %arg1: memref<4xi32, #tpu.memory_space<smem>>, %arg2: memref<64x32xf32, #tpu.memory_space<any>>, %arg3: memref<64x32xf32, #tpu.memory_space<any>>, %arg4: memref<208x128xf32, #tpu.memory_space<vmem>>, %arg5: memref<2x128xf32, #tpu.memory_space<vmem>>, %arg6: memref<4x32xf32, #tpu.memory_space<vmem>>, %arg7: memref<4x!tpu.dma_semaphore, #tpu.memory_space<semaphore_mem>>) attributes {dimension_semantics = [#tpu.dimension_semantics<arbitrary>], iteration_bounds = array<i64: 1>, scalar_prefetch = 1 : i64, scratch_operands = 2 : i64, tpu.core_type = #tpu.core_type<tc>, window_params = [{}, {}, {pipeline_mode = #tpu.pipeline_mode<synchronous>, transform_indices = @transform_2, window_bounds = array<i64: 208, 128>}, {pipeline_mode = #tpu.pipeline_mode<synchronous>, transform_indices = @transform_3, window_bounds = array<i64: 2, 128>}]} {
    %c0 = arith.constant 0 : index
    %0 = memref.load %arg1[%c0] : memref<4xi32, #tpu.memory_space<smem>>
    %c0_i32 = arith.constant 0 : i32
    %c0_i32_0 = arith.constant 0 : i32
    %1 = tpu.memref_slice %arg2[%0, %c0_i32_0] : memref<64x32xf32, #tpu.memory_space<any>> -> memref<1x32xf32, #tpu.memory_space<any>>
    %c0_i32_1 = arith.constant 0 : i32
    %c0_i32_2 = arith.constant 0 : i32
    %2 = tpu.memref_slice %arg6[%c0_i32_1, %c0_i32_2] : memref<4x32xf32, #tpu.memory_space<vmem>> -> memref<1x32xf32, #tpu.memory_space<vmem>>
    %3 = tpu.memref_slice %arg7[%c0_i32] : memref<4x!tpu.dma_semaphore, #tpu.memory_space<semaphore_mem>> -> memref<1x!tpu.dma_semaphore, #tpu.memory_space<semaphore_mem>>
    %4 = tpu.memref_squeeze %3 : memref<1x!tpu.dma_semaphore, #tpu.memory_space<semaphore_mem>> -> memref<!tpu.dma_semaphore, #tpu.memory_space<semaphore_mem>>
    tpu.enqueue_dma source(%1 : memref<1x32xf32, #tpu.memory_space<any>>) target(%2 : memref<1x32xf32, #tpu.memory_space<vmem>>) target_semaphore(%4 : memref<!tpu.dma_semaphore, #tpu.memory_space<semaphore_mem>>)
    %c1 = arith.constant 1 : index
    %5 = memref.load %arg1[%c1] : memref<4xi32, #tpu.memory_space<smem>>
    %c1_i32 = arith.constant 1 : i32
    %c0_i32_3 = arith.constant 0 : i32
    %6 = tpu.memref_slice %arg2[%5, %c0_i32_3] : memref<64x32xf32, #tpu.memory_space<any>> -> memref<1x32xf32, #tpu.memory_space<any>>
    %c1_i32_4 = arith.constant 1 : i32
    %c0_i32_5 = arith.constant 0 : i32
    %7 = tpu.memref_slice %arg6[%c1_i32_4, %c0_i32_5] : memref<4x32xf32, #tpu.memory_space<vmem>> -> memref<1x32xf32, #tpu.memory_space<vmem>>
    %8 = tpu.memref_slice %arg7[%c1_i32] : memref<4x!tpu.dma_semaphore, #tpu.memory_space<semaphore_mem>> -> memref<1x!tpu.dma_semaphore, #tpu.memory_space<semaphore_mem>>
    %9 = tpu.memref_squeeze %8 : memref<1x!tpu.dma_semaphore, #tpu.memory_space<semaphore_mem>> -> memref<!tpu.dma_semaphore, #tpu.memory_space<semaphore_mem>>
    tpu.enqueue_dma source(%6 : memref<1x32xf32, #tpu.memory_space<any>>) target(%7 : memref<1x32xf32, #tpu.memory_space<vmem>>) target_semaphore(%9 : memref<!tpu.dma_semaphore, #tpu.memory_space<semaphore_mem>>)
    %c2 = arith.constant 2 : index
    %10 = memref.load %arg1[%c2] : memref<4xi32, #tpu.memory_space<smem>>
    %c2_i32 = arith.constant 2 : i32
    %c0_i32_6 = arith.constant 0 : i32
    %11 = tpu.memref_slice %arg3[%10, %c0_i32_6] : memref<64x32xf32, #tpu.memory_space<any>> -> memref<1x32xf32, #tpu.memory_space<any>>
    %c2_i32_7 = arith.constant 2 : i32
    %c0_i32_8 = arith.constant 0 : i32
    %12 = tpu.memref_slice %arg6[%c2_i32_7, %c0_i32_8] : memref<4x32xf32, #tpu.memory_space<vmem>> -> memref<1x32xf32, #tpu.memory_space<vmem>>
    %13 = tpu.memref_slice %arg7[%c2_i32] : memref<4x!tpu.dma_semaphore, #tpu.memory_space<semaphore_mem>> -> memref<1x!tpu.dma_semaphore, #tpu.memory_space<semaphore_mem>>
    %14 = tpu.memref_squeeze %13 : memref<1x!tpu.dma_semaphore, #tpu.memory_space<semaphore_mem>> -> memref<!tpu.dma_semaphore, #tpu.memory_space<semaphore_mem>>
    tpu.enqueue_dma source(%11 : memref<1x32xf32, #tpu.memory_space<any>>) target(%12 : memref<1x32xf32, #tpu.memory_space<vmem>>) target_semaphore(%14 : memref<!tpu.dma_semaphore, #tpu.memory_space<semaphore_mem>>)
    %c3 = arith.constant 3 : index
    %15 = memref.load %arg1[%c3] : memref<4xi32, #tpu.memory_space<smem>>
    %c3_i32 = arith.constant 3 : i32
    %c0_i32_9 = arith.constant 0 : i32
    %16 = tpu.memref_slice %arg3[%15, %c0_i32_9] : memref<64x32xf32, #tpu.memory_space<any>> -> memref<1x32xf32, #tpu.memory_space<any>>
    %c3_i32_10 = arith.constant 3 : i32
    %c0_i32_11 = arith.constant 0 : i32
    %17 = tpu.memref_slice %arg6[%c3_i32_10, %c0_i32_11] : memref<4x32xf32, #tpu.memory_space<vmem>> -> memref<1x32xf32, #tpu.memory_space<vmem>>
    %18 = tpu.memref_slice %arg7[%c3_i32] : memref<4x!tpu.dma_semaphore, #tpu.memory_space<semaphore_mem>> -> memref<1x!tpu.dma_semaphore, #tpu.memory_space<semaphore_mem>>
    %19 = tpu.memref_squeeze %18 : memref<1x!tpu.dma_semaphore, #tpu.memory_space<semaphore_mem>> -> memref<!tpu.dma_semaphore, #tpu.memory_space<semaphore_mem>>
    tpu.enqueue_dma source(%16 : memref<1x32xf32, #tpu.memory_space<any>>) target(%17 : memref<1x32xf32, #tpu.memory_space<vmem>>) target_semaphore(%19 : memref<!tpu.dma_semaphore, #tpu.memory_space<semaphore_mem>>)
    %c0_i32_12 = arith.constant 0 : i32
    %c0_i32_13 = arith.constant 0 : i32
    %20 = tpu.memref_slice %arg2[%0, %c0_i32_13] : memref<64x32xf32, #tpu.memory_space<any>> -> memref<1x32xf32, #tpu.memory_space<any>>
    %c0_i32_14 = arith.constant 0 : i32
    %c0_i32_15 = arith.constant 0 : i32
    %21 = tpu.memref_slice %arg6[%c0_i32_14, %c0_i32_15] : memref<4x32xf32, #tpu.memory_space<vmem>> -> memref<1x32xf32, #tpu.memory_space<vmem>>
    %22 = tpu.memref_slice %arg7[%c0_i32_12] : memref<4x!tpu.dma_semaphore, #tpu.memory_space<semaphore_mem>> -> memref<1x!tpu.dma_semaphore, #tpu.memory_space<semaphore_mem>>
    %23 = tpu.memref_squeeze %22 : memref<1x!tpu.dma_semaphore, #tpu.memory_space<semaphore_mem>> -> memref<!tpu.dma_semaphore, #tpu.memory_space<semaphore_mem>>
    tpu.wait_dma2 semaphore(%23 : memref<!tpu.dma_semaphore, #tpu.memory_space<semaphore_mem>>) src(%20 : memref<1x32xf32, #tpu.memory_space<any>>) dst(%21 : memref<1x32xf32, #tpu.memory_space<vmem>>)
    %c1_i32_16 = arith.constant 1 : i32
    %c0_i32_17 = arith.constant 0 : i32
    %24 = tpu.memref_slice %arg2[%5, %c0_i32_17] : memref<64x32xf32, #tpu.memory_space<any>> -> memref<1x32xf32, #tpu.memory_space<any>>
    %c1_i32_18 = arith.constant 1 : i32
    %c0_i32_19 = arith.constant 0 : i32
    %25 = tpu.memref_slice %arg6[%c1_i32_18, %c0_i32_19] : memref<4x32xf32, #tpu.memory_space<vmem>> -> memref<1x32xf32, #tpu.memory_space<vmem>>
    %26 = tpu.memref_slice %arg7[%c1_i32_16] : memref<4x!tpu.dma_semaphore, #tpu.memory_space<semaphore_mem>> -> memref<1x!tpu.dma_semaphore, #tpu.memory_space<semaphore_mem>>
    %27 = tpu.memref_squeeze %26 : memref<1x!tpu.dma_semaphore, #tpu.memory_space<semaphore_mem>> -> memref<!tpu.dma_semaphore, #tpu.memory_space<semaphore_mem>>
    tpu.wait_dma2 semaphore(%27 : memref<!tpu.dma_semaphore, #tpu.memory_space<semaphore_mem>>) src(%24 : memref<1x32xf32, #tpu.memory_space<any>>) dst(%25 : memref<1x32xf32, #tpu.memory_space<vmem>>)
    %c2_i32_20 = arith.constant 2 : i32
    %c0_i32_21 = arith.constant 0 : i32
    %28 = tpu.memref_slice %arg3[%10, %c0_i32_21] : memref<64x32xf32, #tpu.memory_space<any>> -> memref<1x32xf32, #tpu.memory_space<any>>
    %c2_i32_22 = arith.constant 2 : i32
    %c0_i32_23 = arith.constant 0 : i32
    %29 = tpu.memref_slice %arg6[%c2_i32_22, %c0_i32_23] : memref<4x32xf32, #tpu.memory_space<vmem>> -> memref<1x32xf32, #tpu.memory_space<vmem>>
    %30 = tpu.memref_slice %arg7[%c2_i32_20] : memref<4x!tpu.dma_semaphore, #tpu.memory_space<semaphore_mem>> -> memref<1x!tpu.dma_semaphore, #tpu.memory_space<semaphore_mem>>
    %31 = tpu.memref_squeeze %30 : memref<1x!tpu.dma_semaphore, #tpu.memory_space<semaphore_mem>> -> memref<!tpu.dma_semaphore, #tpu.memory_space<semaphore_mem>>
    tpu.wait_dma2 semaphore(%31 : memref<!tpu.dma_semaphore, #tpu.memory_space<semaphore_mem>>) src(%28 : memref<1x32xf32, #tpu.memory_space<any>>) dst(%29 : memref<1x32xf32, #tpu.memory_space<vmem>>)
    %c3_i32_24 = arith.constant 3 : i32
    %c0_i32_25 = arith.constant 0 : i32
    %32 = tpu.memref_slice %arg3[%15, %c0_i32_25] : memref<64x32xf32, #tpu.memory_space<any>> -> memref<1x32xf32, #tpu.memory_space<any>>
    %c3_i32_26 = arith.constant 3 : i32
    %c0_i32_27 = arith.constant 0 : i32
    %33 = tpu.memref_slice %arg6[%c3_i32_26, %c0_i32_27] : memref<4x32xf32, #tpu.memory_space<vmem>> -> memref<1x32xf32, #tpu.memory_space<vmem>>
    %34 = tpu.memref_slice %arg7[%c3_i32_24] : memref<4x!tpu.dma_semaphore, #tpu.memory_space<semaphore_mem>> -> memref<1x!tpu.dma_semaphore, #tpu.memory_space<semaphore_mem>>
    %35 = tpu.memref_squeeze %34 : memref<1x!tpu.dma_semaphore, #tpu.memory_space<semaphore_mem>> -> memref<!tpu.dma_semaphore, #tpu.memory_space<semaphore_mem>>
    tpu.wait_dma2 semaphore(%35 : memref<!tpu.dma_semaphore, #tpu.memory_space<semaphore_mem>>) src(%32 : memref<1x32xf32, #tpu.memory_space<any>>) dst(%33 : memref<1x32xf32, #tpu.memory_space<vmem>>)
    %c64 = arith.constant 64 : index
    %c0_28 = arith.constant 0 : index
    %36 = vector.load %arg4[%c64, %c0_28] : memref<208x128xf32, #tpu.memory_space<vmem>>, vector<1x128xf32>
    %37 = vector.shape_cast %36 : vector<1x128xf32> to vector<1x128xf32>
    %38 = vector.broadcast %37 : vector<1x128xf32> to vector<2x128xf32>
    %c0_29 = arith.constant 0 : index
    %c0_30 = arith.constant 0 : index
    %39 = vector.load %arg6[%c0_29, %c0_30] : memref<4x32xf32, #tpu.memory_space<vmem>>, vector<2x32xf32>
    %c0_31 = arith.constant 0 : index
    %c0_32 = arith.constant 0 : index
    %40 = vector.load %arg4[%c0_31, %c0_32] : memref<208x128xf32, #tpu.memory_space<vmem>>, vector<32x128xf32>
    %cst = arith.constant dense<0.000000e+00> : vector<2x128xf32>
    %41 = tpu.matmul %39, %40, %cst {dimension_numbers = #tpu.dot_dimension_numbers<[1], [0], [0], [1], [0, 0, 1, 1], [], []>} : vector<2x32xf32>, vector<32x128xf32>, vector<2x128xf32> -> vector<2x128xf32>
    %42 = arith.addf %38, %41 : vector<2x128xf32>
    %c2_33 = arith.constant 2 : index
    %c0_34 = arith.constant 0 : index
    %43 = vector.load %arg6[%c2_33, %c0_34] : memref<4x32xf32, #tpu.memory_space<vmem>>, vector<2x32xf32>
    %c32 = arith.constant 32 : index
    %c0_35 = arith.constant 0 : index
    %44 = vector.load %arg4[%c32, %c0_35] : memref<208x128xf32, #tpu.memory_space<vmem>>, vector<32x128xf32>
    %cst_36 = arith.constant dense<0.000000e+00> : vector<2x128xf32>
    %45 = tpu.matmul %43, %44, %cst_36 {dimension_numbers = #tpu.dot_dimension_numbers<[1], [0], [0], [1], [0, 0, 1, 1], [], []>} : vector<2x32xf32>, vector<32x128xf32>, vector<2x128xf32> -> vector<2x128xf32>
    %46 = arith.addf %42, %45 : vector<2x128xf32>
    %47 = math.tanh %46 : vector<2x128xf32>
    %c72 = arith.constant 72 : index
    %c0_37 = arith.constant 0 : index
    %48 = vector.load %arg4[%c72, %c0_37] : memref<208x128xf32, #tpu.memory_space<vmem>>, vector<128x128xf32>
    %c200 = arith.constant 200 : index
    %c0_38 = arith.constant 0 : index
    %49 = vector.load %arg4[%c200, %c0_38] : memref<208x128xf32, #tpu.memory_space<vmem>>, vector<1x128xf32>
    %cst_39 = arith.constant dense<0.000000e+00> : vector<2x128xf32>
    %50 = tpu.matmul %47, %48, %cst_39 {dimension_numbers = #tpu.dot_dimension_numbers<[1], [0], [0], [1], [0, 0, 1, 1], [], []>} : vector<2x128xf32>, vector<128x128xf32>, vector<2x128xf32> -> vector<2x128xf32>
    %51 = vector.broadcast %49 : vector<1x128xf32> to vector<2x128xf32>
    %52 = arith.addf %50, %51 : vector<2x128xf32>
    %c0_40 = arith.constant 0 : index
    %c0_41 = arith.constant 0 : index
    %53 = vector.load %arg5[%c0_40, %c0_41] : memref<2x128xf32, #tpu.memory_space<vmem>>, vector<2x128xf32>
    tpu.vector_store %arg5[%c0_40, %c0_41], %52 {strides = array<i32>} : memref<2x128xf32, #tpu.memory_space<vmem>>, vector<2x128xf32>,
    return
  }
  func.func @transform_2(%arg0: i32, %arg1: memref<4xi32, #tpu.memory_space<smem>>) -> (i32, i32) {
    %c0_i32 = arith.constant 0 : i32
    %c0_i32_0 = arith.constant 0 : i32
    %c0_i32_1 = arith.constant 0 : i32
    return %c0_i32, %c0_i32_0 : i32, i32
  }
  func.func @transform_3(%arg0: i32, %arg1: memref<4xi32, #tpu.memory_space<smem>>) -> (i32, i32) {
    %c0_i32 = arith.constant 0 : i32
    %c0_i32_0 = arith.constant 0 : i32
    %c0_i32_1 = arith.constant 0 : i32
    return %c0_i32, %c0_i32_0 : i32, i32
  }
}

</mosaic_0001>

<bundles_post_ra>
// kernel: tpu_custom_call.1
= control target key start
LH: loop header
LB: loop body
LE: loop exit
PB: predicated region body
PF: predicated region fallthrough
CT: control target
= control target key end

     0   :  { %s452_s18 = smov [#allocation5]   ;;  %s503_s0 = inlined_call_operand.vmem [shape: s32[4], index: 0, kind: input, shape index: {}]   ;;  %s504_s1 = inlined_call_operand.vmem [shape: f32[64,32], index: 1, kind: input, shape index: {}]   ;;  %s505_s2 = inlined_call_operand.vmem [shape: f32[64,32], index: 2, kind: input, shape index: {}]   ;;  %s506_s3 = inlined_call_operand.hbm [shape: f32[208,128], index: 3, kind: input, shape index: {}]   ;;  %s507_s4 = inlined_call_operand.hbm [shape: f32[2,128], index: 4, kind: output, shape index: {}]  }
   0x1   :  { %s10_s17 = sshll.u32 %s503_s0, 4  ;;  %s11_s17 = int_to_ptr.vmem [resolvable:$true] %s10_s17 }
   0x2   :  { %13 = dma.vmem_to_smem %s11_s17, 16, %s452_s18, [#allocation4] }
   0x3   :  { %438 = dma.done.wait [#allocation4], 16 }
   0x4   :  { %439 = vsyncadd [#allocation4], 4294967280 }
   0x5   :  { %16 = sfence }
   0x6   :  { %17 = vsyncpa [#allocation7], 0 }
   0x7   :  { %18 = vsyncpa [#allocation8], 0  ;;  %s23_s21 = sshll.u32 %s506_s3, 4  ;;  %s453_s22 = smov [#allocation6]   ;;  %s24_s21 = int_to_ptr.hbm [resolvable:$true] %s23_s21 }
   0x8   :  { %s25_s23 = sshll.u32 %s453_s22, 4  ;;  %s454_s24 = smov 128   ;;  %s26_s23 = int_to_ptr.vmem [resolvable:$true] %s25_s23 }
   0x9   :  { %s455_s25 = smov 8  }
   0xa   :  { %31 = dma.hbm_to_vmem [thread:$0]  %s24_s21, 3328, %s26_s23, [#allocation7], %s454_s24, %s454_s24, %s455_s25  }
   0xb   :  { %440 = dma.done.wait [#allocation7], 3328  }
   0xc   :  { %441 = vsyncadd [#allocation7], 4294963968  ;;  %s36_s0 = sld [smem:[#allocation5]] }
  0x12   :  { %s37_s28 = scalar_lea.vmem %s504_s1, %s36_s0 }
  0x13   :  { %v52_v0 = vld [vmem:[%s37_s28] sm:$0x1] }
  0x14   :  { %53 = vst [vmem:[#allocation2] sm:$0x1] %v52_v0 }
  0x15   :  { %71 = vsyncadd [#allocation3], 16  ;;  %s360_s29 = sld [smem:[#allocation5 + $0x1]] }
  0x1b   :  { %s73_s5 = scalar_lea.vmem %s504_s1, %s360_s29 }
  0x1c   :  { %v90_v1 = vld [vmem:[%s73_s5] sm:$0x1] }
  0x1d   :  { %91 = vst [vmem:[#allocation2 + $0x1] sm:$0x1] %v90_v1 }
  0x1e   :  { %109 = vsyncadd [#allocation3 + $0x1], 16  ;;  %s361_s6 = sld [smem:[#allocation5 + $0x2]] }
  0x24   :  { %s111_s9 = scalar_lea.vmem %s505_s2, %s361_s6 }
  0x25   :  { %v128_v2 = vld [vmem:[%s111_s9] sm:$0x1] }
  0x26   :  { %129 = vst [vmem:[#allocation2 + $0x2] sm:$0x1] %v128_v2 }
  0x27   :  { %147 = vsyncadd [#allocation3 + $0x2], 16  ;;  %s362_s10 = sld [smem:[#allocation5 + $0x3]] }
  0x2d   :  { %s149_s13 = scalar_lea.vmem %s505_s2, %s362_s10 }
  0x2e   :  { %v166_v3 = vld [vmem:[%s149_s13] sm:$0x1] }
  0x2f   :  { %167 = vst [vmem:[#allocation2 + $0x3] sm:$0x1] %v166_v3 }
  0x30   :  { %185 = vsyncadd [#allocation3 + $0x3], 16 }
  0x31   :  { %442 = dma.done.wait [#allocation3], 16 }
  0x32   :  { %443 = vsyncadd [#allocation3], 4294967280 }
  0x33   :  { %444 = dma.done.wait [#allocation3 + $0x1], 16 }
  0x34   :  { %445 = vsyncadd [#allocation3 + $0x1], 4294967280 }
  0x35   :  { %446 = dma.done.wait [#allocation3 + $0x2], 16 }
  0x36   :  { %447 = vsyncadd [#allocation3 + $0x2], 4294967280 }
  0x37   :  { %448 = dma.done.wait [#allocation3 + $0x3], 16 }
  0x38   :  { %449 = vsyncadd [#allocation3 + $0x3], 4294967280  ;;  %v201_v4 = vld [vmem:[#allocation6 + $0x18] sm:$0xff]  ;;  %v200_v5 = vld [vmem:[#allocation6 + $0x10] sm:$0xff]  ;;  %vm202_vm0 = vcmask 261120   ;;  %s456_s1 = smov [#allocation9]  }
  0x39   :  { %v231_v6 = vld [vmem:[#allocation6 + $0x38] sm:$0xff]  ;;  %218 = vmatpush.msra.mxu0 %v201_v4  ;;  %v230_v7 = vld [vmem:[#allocation6 + $0x30] sm:$0xff]  ;;  %v199_v8 = vld [vmem:[#allocation6 + $0x8] sm:$0xff]  ;;  %s301_s2 = sshll.u32 %s456_s1, 4  ;;  %s303_s16 = sshll.u32 %s507_s4, 4  ;;  %s302_s2 = int_to_ptr.vmem [resolvable:$true] %s301_s2  ;;  %s304_s16 = int_to_ptr.hbm [resolvable:$true] %s303_s16 }
  0x3a   :  { %247 = vmatpush.msra.mxu1 %v231_v6  ;;  %v229_v9 = vld [vmem:[#allocation6 + $0x28] sm:$0xff]  ;;  %v272_v10 = vld [vmem:[#allocation6 + $0xc0] sm:$0xff]  ;;  %v271_v11 = vld [vmem:[#allocation6 + $0xb8] sm:$0xff] }
  0x3b   :  { %219 = vmatpush.msra.mxu0 %v200_v5  ;;  %v198_v12 = vld [vmem:[#allocation6] sm:$0xff]  ;;  %275 = vmatpush.msra.mxu2 %v272_v10  ;;  %v197_v14 = vld [vmem:[#allocation2] sm:$0x3]  ;;  %v227_v15 = vld [vmem:[#allocation2 + $0x2] sm:$0x3] }
  0x3c   :  { %248 = vmatpush.msra.mxu1 %v230_v7  ;;  %v228_v13 = vld [vmem:[#allocation6 + $0x20] sm:$0xff]  ;;  %v270_v16 = vld [vmem:[#allocation6 + $0xb0] sm:$0xff]  ;;  %v269_v17 = vld [vmem:[#allocation6 + $0xa8] sm:$0xff] }
  0x3d   :  { %220 = vmatpush.msra.mxu0 %v199_v8  ;;  %276 = vmatpush.msra.mxu2 %v271_v11  ;;  %v268_v18 = vld [vmem:[#allocation6 + $0xa0] sm:$0xff]  ;;  %v267_v19 = vld [vmem:[#allocation6 + $0x98] sm:$0xff]  ;;  %v266_v20 = vld [vmem:[#allocation6 + $0x90] sm:$0xff] }
  0x3e   :  { %249 = vmatpush.msra.mxu1 %v229_v9  ;;  %v265_v21 = vld [vmem:[#allocation6 + $0x88] sm:$0xff]  ;;  %v264_v22 = vld [vmem:[#allocation6 + $0x80] sm:$0xff]  ;;  %v263_v23 = vld [vmem:[#allocation6 + $0x78] sm:$0xff] }
  0x3f   :  { %221 = vmatpush.msra.mxu0 %v198_v12  ;;  %277 = vmatpush.msra.mxu2 %v270_v16  ;;  %v262_v24 = vld [vmem:[#allocation6 + $0x70] sm:$0xff]  ;;  %v261_v25 = vld [vmem:[#allocation6 + $0x68] sm:$0xff]  ;;  %v260_v26 = vld [vmem:[#allocation6 + $0x60] sm:$0xff] }
  0x40   :  { %250 = vmatpush.msra.mxu1 %v228_v13  ;;  %363 = vmatmul.msk.f32.vlgmr.msra.gmra.mxu0 %vm202_vm0, %v197_v14  ;;  %v259_v27 = vld [vmem:[#allocation6 + $0x58] sm:$0xff]  ;;  %v258_v28 = vld [vmem:[#allocation6 + $0x50] sm:$0xff]  ;;  %v257_v29 = vld [vmem:[#allocation6 + $0x48] sm:$0xff] }
  0x41   :  { %364 = vmatmul.msk.f32.vlgmr.msra.gmra.mxu1 %vm202_vm0, %v227_v15  ;;  %278 = vmatpush.msra.mxu2 %v269_v17  ;;  %v374_v30 = vld [vmem:[#allocation6 + $0x40] ss:$0 sm:$0xff]  ;;  %v375_v36 = vld [vmem:[#allocation6 + $0xc8] ss:$0 sm:$0xff] }
  0x43   :  { %279 = vmatpush.msra.mxu2 %v268_v18 }
  0x45   :  { %280 = vmatpush.msra.mxu2 %v267_v19 }
  0x47   :  { %281 = vmatpush.msra.mxu2 %v266_v20 }
  0x49   :  { %282 = vmatpush.msra.mxu2 %v265_v21 }
  0x4b   :  { %283 = vmatpush.msra.mxu2 %v264_v22 }
  0x4d   :  { %284 = vmatpush.msra.mxu2 %v263_v23 }
  0x4f   :  { %285 = vmatpush.msra.mxu2 %v262_v24 }
  0x51   :  { %286 = vmatpush.msra.mxu2 %v261_v25 }
  0x53   :  { %287 = vmatpush.msra.mxu2 %v260_v26 }
  0x55   :  { %288 = vmatpush.msra.mxu2 %v259_v27 }
  0x57   :  { %289 = vmatpush.msra.mxu2 %v258_v28 }
  0x59   :  { %290 = vmatpush.msra.mxu2 %v257_v29 }
  0xbd   :  { %v223_v31 = vpop.f32.mrf.mxu0 }
  0xbe   :  { %v252_v32 = vpop.f32.mrf.mxu1  ;;  %v226_v33 = vadd.f32 %v374_v30, %v223_v31 }
  0xc0   :  { %v255_v34 = vadd.f32 %v252_v32, %v226_v33 }
  0xc2   :  { %376 = vtanh.f32 %v255_v34 }
  0xc8   :  { %v377_v35 = vpop.eup %376 }
  0xc9   :  { %291 = vmatmul.f32.vlgmr.msra.gmra.mxu2 %v377_v35 }
 0x14c   :  { %v292_v37 = vpop.f32.mrf.mxu2 }
 0x14d   :  { %v293_v38 = vadd.f32 %v375_v36, %v292_v37 }
 0x14f   :  { %295 = vst [vmem:[#allocation9] sm:$0x3] %v293_v38 }
 0x150   :  { %306 = dma.vmem_to_hbm [thread:$0]  %s302_s2, 32, %s304_s16, [#allocation8]  }
 0x151   :  { %450 = dma.done.wait [#allocation8], 32  }
 0x152   :  { %451 = vsyncadd [#allocation8], 4294967264 }
 0x153   :  { %311 = vsyncpa [#allocation7], 1 }
 0x154   :  { %312 = vsyncpa [#allocation8], 1 }
 0x155   :  { %313 = vsyncmov [#allocation3] }
 0x158   :  { %s314_s17 = vpop.sfrf %313 }
 0x159   :  { %p365_p0 = scmp.ne.s32.totalorder %s314_s17, 0 }
 0x15b   :  { %318 = shalt.err (%p365_p0)  }
 0x15c   :  { %320 = vsyncmov [#allocation3 + $0x1] }
 0x15f   :  { %s321_s18 = vpop.sfrf %320 }
 0x160   :  { %p366_p1 = scmp.ne.s32.totalorder %s321_s18, 0 }
 0x162   :  { %325 = shalt.err (%p366_p1)  }
 0x163   :  { %327 = vsyncmov [#allocation3 + $0x2] }
 0x166   :  { %s328_s4 = vpop.sfrf %327 }
 0x167   :  { %p367_p2 = scmp.ne.s32.totalorder %s328_s4, 0 }
 0x169   :  { %332 = shalt.err (%p367_p2)  }
 0x16a   :  { %334 = vsyncmov [#allocation3 + $0x3] }
 0x16d   :  { %s335_s19 = vpop.sfrf %334 }
 0x16e   :  { %p368_p3 = scmp.ne.s32.totalorder %s335_s19, 0 }
 0x170   :  { %339 = shalt.err (%p368_p3)  }

</bundles_post_ra>
